<compile_context>
chip_gen: v5e
topology: v5e:2x2
jax: 0.10.0
libtpu: 0.0.40
codegen_flags: <defaults>
</compile_context>

<pallas_src>
import functools

import jax
import jax.numpy as jnp
from jax.experimental import pallas as pl
from jax.experimental.pallas import tpu as pltpu


def _round_up(n, m):
    return ((n + m - 1) // m) * m


def _pad_to(a, shape):
    pads = [(0, t - s) for s, t in zip(a.shape, shape)]
    return jnp.pad(a, pads)


def _policy_kernel(x_ref, w1_ref, b1_ref, w2_ref, b2_ref, w3_ref, b3_ref,
                   mean_ref):
    """One batch tile: mean = tanh(tanh(x@W1+b1)@W2+b2) @ W3 + b3."""
    w1 = w1_ref[...]
    cdt = w1.dtype                       # MXU operand dtype (f32 or bf16)
    x = x_ref[...].astype(cdt)
    h1 = jnp.tanh(
        jnp.dot(x, w1, preferred_element_type=jnp.float32) + b1_ref[...])
    h2 = jnp.tanh(
        jnp.dot(h1.astype(cdt), w2_ref[...],
                preferred_element_type=jnp.float32) + b2_ref[...])
    mean_ref[...] = (
        jnp.dot(h2.astype(cdt), w3_ref[...],
                preferred_element_type=jnp.float32) + b3_ref[...])


def init_policy_params(key, state_space, action_space, hidden=64):
    """Matches Policy.init_weights: weights ~ N(0, 1), biases = 0, sigma = 0.5."""
    k1, k2, k3 = jax.random.split(key, 3)
    # Stored as (in, out): transpose of PyTorch's (out, in) nn.Linear weight.
    w1 = jax.random.normal(k1, (state_space, hidden), jnp.float32)
    b1 = jnp.zeros((hidden,), jnp.float32)
    w2 = jax.random.normal(k2, (hidden, hidden), jnp.float32)
    b2 = jnp.zeros((hidden,), jnp.float32)
    w3 = jax.random.normal(k3, (hidden, action_space), jnp.float32)
    b3 = jnp.zeros((action_space,), jnp.float32)
    sigma = jnp.full((action_space,), 0.5, jnp.float32)
    return (w1, b1, w2, b2, w3, b3, sigma)


def prepare_params(params, *, compute_dtype=jnp.float32):
    """One-time TPU prep: zero-pad hidden/output dims to 128 lanes.

    Call once per parameter update, NOT per forward step. The input (K)
    dimension of W1 is left unpadded; biases stay f32 (added to the f32
    accumulator). Set compute_dtype=jnp.bfloat16 to halve weight DMA bytes.
    """
    w1, b1, w2, b2, w3, b3, sigma = params
    S, H = w1.shape
    A = w3.shape[1]
    Hp = _round_up(H, 128)
    Ap = _round_up(A, 128)
    w1p = _pad_to(w1, (S, Hp)).astype(compute_dtype)
    b1p = _pad_to(b1.reshape(1, -1), (1, Hp)).astype(jnp.float32)
    w2p = _pad_to(w2, (Hp, Hp)).astype(compute_dtype)
    b2p = _pad_to(b2.reshape(1, -1), (1, Hp)).astype(jnp.float32)
    w3p = _pad_to(w3, (Hp, Ap)).astype(compute_dtype)
    b3p = _pad_to(b3.reshape(1, -1), (1, Ap)).astype(jnp.float32)
    return (w1p, b1p, w2p, b2p, w3p, b3p, sigma.astype(jnp.float32))


@functools.partial(jax.jit, static_argnames=("block_b",))
def policy_forward(x, prepared, *, block_b=256):
    """Returns (action_mean, sigma): the parameters of Normal(action_mean, sigma)."""
    w1p, b1p, w2p, b2p, w3p, b3p, sigma_param = prepared
    x = x.astype(jnp.float32)
    B, S = x.shape
    A = sigma_param.shape[0]
    Ap = b3p.shape[1]

    # Batch tiling: one full-extent block for small batches; otherwise a 1-D
    # "parallel" grid of block_b-row tiles with the weights resident
    # (constant index_map).  block_b=256 keeps tiles far below v7x's scoped VMEM.
    if B <= block_b:
        tile_b, Bp = B, B
        x_in = x
    else:
        assert block_b % 8 == 0, "block_b must be a multiple of 8 sublanes"
        tile_b = block_b
        Bp = _round_up(B, block_b)
        x_in = _pad_to(x, (Bp, S)) if Bp != B else x

    const = lambda i: (0, 0)
    mean_p = pl.pallas_call(
        _policy_kernel,
        out_shape=jax.ShapeDtypeStruct((Bp, Ap), jnp.float32),
        grid=(Bp // tile_b,),
        in_specs=[
            pl.BlockSpec((tile_b, S), lambda i: (i, 0)),
            pl.BlockSpec(w1p.shape, const),
            pl.BlockSpec(b1p.shape, const),
            pl.BlockSpec(w2p.shape, const),
            pl.BlockSpec(b2p.shape, const),
            pl.BlockSpec(w3p.shape, const),
            pl.BlockSpec(b3p.shape, const),
        ],
        out_specs=pl.BlockSpec((tile_b, Ap), lambda i: (i, 0)),
        compiler_params=pltpu.CompilerParams(
            dimension_semantics=("parallel",)),
    )(x_in, w1p, b1p, w2p, b2p, w3p, b3p)

    action_mean = mean_p[:B, :A]
    sigma = jax.nn.softplus(sigma_param)   # batch-independent; plain JAX, tiny
    # TODO(synk): Normal(action_mean, sigma) sampling / log_prob left to caller.
    return action_mean, sigma


def _reference_forward(x, params):
    w1, b1, w2, b2, w3, b3, sigma = params
    h1 = jnp.tanh(x @ w1 + b1)
    h2 = jnp.tanh(h1 @ w2 + b2)
    mean = h2 @ w3 + b3
    return mean, jax.nn.softplus(sigma)


if __name__ == "__main__":
    key = jax.random.PRNGKey(0)
    state_space, action_space = 11, 3

    kx, kp, kb = jax.random.split(key, 3)
    params = init_policy_params(kp, state_space, action_space)
    prepared = prepare_params(params)        # one-time padding (NOT per step)

    # Small rollout batch (typical RL step) — single-block path.
    x_small = jax.random.normal(kx, (2, state_space), jnp.float32)
    mean, sigma = policy_forward(x_small, prepared)
    jax.block_until_ready((mean, sigma))
    ref_mean, ref_sigma = _reference_forward(x_small, params)
    assert mean.shape == (2, action_space)
    assert sigma.shape == (action_space,)
    assert jnp.allclose(mean, ref_mean, atol=1e-4, rtol=1e-4)
    assert jnp.allclose(sigma, ref_sigma, atol=1e-6, rtol=1e-6)

    # Larger batch exercises the tiled "parallel" grid path (resident weights).
    x_big = jax.random.normal(kb, (300, state_space), jnp.float32)
    mean_b, sigma_b = policy_forward(x_big, prepared, block_b=128)
    jax.block_until_ready((mean_b, sigma_b))
    ref_mean_b, _ = _reference_forward(x_big, params)
    assert mean_b.shape == (300, action_space)
    assert jnp.allclose(mean_b, ref_mean_b, atol=1e-4, rtol=1e-4)

    print("KERNEL_OK")
</pallas_src>

<mosaic_0001>
module attributes {stable_mosaic.version = 11 : i64} {
  func.func @_policy_kernel(%arg0: i32, %arg1: memref<2x11xf32, #tpu.memory_space<vmem>>, %arg2: memref<11x128xf32, #tpu.memory_space<vmem>>, %arg3: memref<1x128xf32, #tpu.memory_space<vmem>>, %arg4: memref<128x128xf32, #tpu.memory_space<vmem>>, %arg5: memref<1x128xf32, #tpu.memory_space<vmem>>, %arg6: memref<128x128xf32, #tpu.memory_space<vmem>>, %arg7: memref<1x128xf32, #tpu.memory_space<vmem>>, %arg8: memref<2x128xf32, #tpu.memory_space<vmem>>) attributes {dimension_semantics = [#tpu.dimension_semantics<parallel>], iteration_bounds = array<i64: 1>, scalar_prefetch = 0 : i64, scratch_operands = 0 : i64, tpu.core_type = #tpu.core_type<tc>, window_params = [{transform_indices = @transform_0, window_bounds = array<i64: 2, 11>}, {pipeline_mode = #tpu.pipeline_mode<synchronous>, transform_indices = @transform_1, window_bounds = array<i64: 11, 128>}, {pipeline_mode = #tpu.pipeline_mode<synchronous>, transform_indices = @transform_2, window_bounds = array<i64: 1, 128>}, {pipeline_mode = #tpu.pipeline_mode<synchronous>, transform_indices = @transform_3, window_bounds = array<i64: 128, 128>}, {pipeline_mode = #tpu.pipeline_mode<synchronous>, transform_indices = @transform_4, window_bounds = array<i64: 1, 128>}, {pipeline_mode = #tpu.pipeline_mode<synchronous>, transform_indices = @transform_5, window_bounds = array<i64: 128, 128>}, {pipeline_mode = #tpu.pipeline_mode<synchronous>, transform_indices = @transform_6, window_bounds = array<i64: 1, 128>}, {transform_indices = @transform_7, window_bounds = array<i64: 2, 128>}]} {
    %c0 = arith.constant 0 : index
    %c0_0 = arith.constant 0 : index
    %0 = vector.load %arg2[%c0, %c0_0] : memref<11x128xf32, #tpu.memory_space<vmem>>, vector<11x128xf32>
    %c0_1 = arith.constant 0 : index
    %c0_2 = arith.constant 0 : index
    %1 = vector.load %arg1[%c0_1, %c0_2] : memref<2x11xf32, #tpu.memory_space<vmem>>, vector<2x11xf32>
    %cst = arith.constant dense<0.000000e+00> : vector<2x128xf32>
    %2 = tpu.matmul %1, %0, %cst {dimension_numbers = #tpu.dot_dimension_numbers<[1], [0], [0], [1], [0, 0, 1, 1], [], []>} : vector<2x11xf32>, vector<11x128xf32>, vector<2x128xf32> -> vector<2x128xf32>
    %c0_3 = arith.constant 0 : index
    %c0_4 = arith.constant 0 : index
    %3 = vector.load %arg3[%c0_3, %c0_4] : memref<1x128xf32, #tpu.memory_space<vmem>>, vector<1x128xf32>
    %4 = vector.broadcast %3 : vector<1x128xf32> to vector<2x128xf32>
    %5 = arith.addf %2, %4 : vector<2x128xf32>
    %6 = math.tanh %5 : vector<2x128xf32>
    %c0_5 = arith.constant 0 : index
    %c0_6 = arith.constant 0 : index
    %7 = vector.load %arg4[%c0_5, %c0_6] : memref<128x128xf32, #tpu.memory_space<vmem>>, vector<128x128xf32>
    %cst_7 = arith.constant dense<0.000000e+00> : vector<2x128xf32>
    %8 = tpu.matmul %6, %7, %cst_7 {dimension_numbers = #tpu.dot_dimension_numbers<[1], [0], [0], [1], [0, 0, 1, 1], [], []>} : vector<2x128xf32>, vector<128x128xf32>, vector<2x128xf32> -> vector<2x128xf32>
    %c0_8 = arith.constant 0 : index
    %c0_9 = arith.constant 0 : index
    %9 = vector.load %arg5[%c0_8, %c0_9] : memref<1x128xf32, #tpu.memory_space<vmem>>, vector<1x128xf32>
    %10 = vector.broadcast %9 : vector<1x128xf32> to vector<2x128xf32>
    %11 = arith.addf %8, %10 : vector<2x128xf32>
    %12 = math.tanh %11 : vector<2x128xf32>
    %c0_10 = arith.constant 0 : index
    %c0_11 = arith.constant 0 : index
    %13 = vector.load %arg6[%c0_10, %c0_11] : memref<128x128xf32, #tpu.memory_space<vmem>>, vector<128x128xf32>
    %cst_12 = arith.constant dense<0.000000e+00> : vector<2x128xf32>
    %14 = tpu.matmul %12, %13, %cst_12 {dimension_numbers = #tpu.dot_dimension_numbers<[1], [0], [0], [1], [0, 0, 1, 1], [], []>} : vector<2x128xf32>, vector<128x128xf32>, vector<2x128xf32> -> vector<2x128xf32>
    %c0_13 = arith.constant 0 : index
    %c0_14 = arith.constant 0 : index
    %15 = vector.load %arg7[%c0_13, %c0_14] : memref<1x128xf32, #tpu.memory_space<vmem>>, vector<1x128xf32>
    %16 = vector.broadcast %15 : vector<1x128xf32> to vector<2x128xf32>
    %17 = arith.addf %14, %16 : vector<2x128xf32>
    %c0_15 = arith.constant 0 : index
    %c0_16 = arith.constant 0 : index
    %18 = vector.load %arg8[%c0_15, %c0_16] : memref<2x128xf32, #tpu.memory_space<vmem>>, vector<2x128xf32>
    tpu.vector_store %arg8[%c0_15, %c0_16], %17 {strides = array<i32>} : memref<2x128xf32, #tpu.memory_space<vmem>>, vector<2x128xf32>,
    return
  }
  func.func @transform_0(%arg0: i32) -> (i32, i32) {
    %c0_i32 = arith.constant 0 : i32
    %c0_i32_0 = arith.constant 0 : i32
    return %arg0, %c0_i32 : i32, i32
  }
  func.func @transform_1(%arg0: i32) -> (i32, i32) {
    %c0_i32 = arith.constant 0 : i32
    %c0_i32_0 = arith.constant 0 : i32
    %c0_i32_1 = arith.constant 0 : i32
    return %c0_i32, %c0_i32_0 : i32, i32
  }
  func.func @transform_2(%arg0: i32) -> (i32, i32) {
    %c0_i32 = arith.constant 0 : i32
    %c0_i32_0 = arith.constant 0 : i32
    %c0_i32_1 = arith.constant 0 : i32
    return %c0_i32, %c0_i32_0 : i32, i32
  }
  func.func @transform_3(%arg0: i32) -> (i32, i32) {
    %c0_i32 = arith.constant 0 : i32
    %c0_i32_0 = arith.constant 0 : i32
    %c0_i32_1 = arith.constant 0 : i32
    return %c0_i32, %c0_i32_0 : i32, i32
  }
  func.func @transform_4(%arg0: i32) -> (i32, i32) {
    %c0_i32 = arith.constant 0 : i32
    %c0_i32_0 = arith.constant 0 : i32
    %c0_i32_1 = arith.constant 0 : i32
    return %c0_i32, %c0_i32_0 : i32, i32
  }
  func.func @transform_5(%arg0: i32) -> (i32, i32) {
    %c0_i32 = arith.constant 0 : i32
    %c0_i32_0 = arith.constant 0 : i32
    %c0_i32_1 = arith.constant 0 : i32
    return %c0_i32, %c0_i32_0 : i32, i32
  }
  func.func @transform_6(%arg0: i32) -> (i32, i32) {
    %c0_i32 = arith.constant 0 : i32
    %c0_i32_0 = arith.constant 0 : i32
    %c0_i32_1 = arith.constant 0 : i32
    return %c0_i32, %c0_i32_0 : i32, i32
  }
  func.func @transform_7(%arg0: i32) -> (i32, i32) {
    %c0_i32 = arith.constant 0 : i32
    %c0_i32_0 = arith.constant 0 : i32
    return %arg0, %c0_i32 : i32, i32
  }
}

</mosaic_0001>

<bundles_post_ra>
// kernel: policy_forward.1
= control target key start
LH: loop header
LB: loop body
LE: loop exit
PB: predicated region body
PF: predicated region fallthrough
CT: control target
= control target key end

     0   :  { %12 = vsyncpa [#allocation3], 0  ;;  %s440_s0 = inlined_call_operand.vmem [shape: f32[2,11], index: 0, kind: input, shape index: {}]   ;;  %s441_s1 = inlined_call_operand.hbm [shape: f32[11,128], index: 1, kind: input, shape index: {}]   ;;  %s442_s2 = inlined_call_operand.hbm [shape: f32[1,128], index: 2, kind: input, shape index: {}]   ;;  %s443_s3 = inlined_call_operand.hbm [shape: f32[128,128], index: 3, kind: input, shape index: {}]   ;;  %s444_s4 = inlined_call_operand.vmem [shape: f32[1,128], index: 4, kind: input, shape index: {}]   ;;  %s445_s5 = inlined_call_operand.hbm [shape: f32[128,128], index: 5, kind: input, shape index: {}]   ;;  %s446_s6 = inlined_call_operand.vmem [shape: f32[1,128], index: 6, kind: input, shape index: {}]   ;;  %s447_s7 = inlined_call_operand.hbm [shape: f32[2,128], index: 7, kind: output, shape index: {}]  }
   0x1   :  { %13 = vsyncpa [#allocation6], 0 }
   0x2   :  { %14 = vsyncpa [#allocation9], 0  ;;  %s36_s26 = sshll.u32 %s442_s2, 4  ;;  %s37_s26 = int_to_ptr.hbm [resolvable:$true] %s36_s26 }
   0x3   :  { %15 = vsyncpa [#allocation4], 0  ;;  %s369_s27 = smov [#allocation5]   ;;  %s22_s8 = sshll.u32 %s441_s1, 4  ;;  %s23_s8 = int_to_ptr.hbm [resolvable:$true] %s22_s8 }
   0x4   :  { %s38_s28 = sshll.u32 %s369_s27, 4  ;;  %s370_s9 = smov [#allocation2]   ;;  %s39_s28 = int_to_ptr.vmem [resolvable:$true] %s38_s28 }
   0x5   :  { %41 = dma.hbm_to_vmem [thread:$0]  %s37_s26, 16, %s39_s28, [#allocation6]  }
   0x6   :  { %s24_s10 = sshll.u32 %s370_s9, 4  ;;  %s371_s11 = smov 128   ;;  %s25_s10 = int_to_ptr.vmem [resolvable:$true] %s24_s10 }
   0x7   :  { %s372_s12 = smov 8   ;;  %s46_s2 = sshll.u32 %s443_s3, 4  ;;  %s47_s2 = int_to_ptr.hbm [resolvable:$true] %s46_s2 }
   0x8   :  { %30 = dma.hbm_to_vmem [thread:$0]  %s23_s8, 256, %s25_s10, [#allocation3], %s371_s11, %s371_s11, %s372_s12  }
   0x9   :  { %s373_s15 = smov [#allocation7]   ;;  %s61_s1 = sshll.u32 %s445_s5, 4  ;;  %s62_s1 = int_to_ptr.hbm [resolvable:$true] %s61_s1 }
   0xa   :  { %s48_s16 = sshll.u32 %s373_s15, 4  ;;  %s374_s19 = smov [#allocation8]   ;;  %s49_s16 = int_to_ptr.vmem [resolvable:$true] %s48_s16 }
   0xb   :  { %54 = dma.hbm_to_vmem [thread:$0]  %s47_s2, 2048, %s49_s16, [#allocation6], %s371_s11, %s371_s11, %s372_s12  }
   0xc   :  { %s63_s20 = sshll.u32 %s374_s19, 4  ;;  %s64_s20 = int_to_ptr.vmem [resolvable:$true] %s63_s20 }
   0xd   :  { %69 = dma.hbm_to_vmem [thread:$0]  %s62_s1, 2048, %s64_s20, [#allocation9], %s371_s11, %s371_s11, %s372_s12  }
   0xe   :  { %361 = dma.done.wait [#allocation3], 256  }
   0xf   :  { %362 = vsyncadd [#allocation3], 4294967040 }
  0x10   :  { %363 = dma.done.wait [#allocation6], 2064  }
  0x11   :  { %364 = vsyncadd [#allocation6], 4294965232 }
  0x12   :  { %365 = dma.done.wait [#allocation9], 2048  }
  0x13   :  { %366 = vsyncadd [#allocation9], 4294965248  ;;  %vm99_vm0 = vcmask 1042432   ;;  %v89_v0 = vld [vmem:[#allocation2 + $0x8] sm:$0x7]  ;;  %v88_v1 = vld [vmem:[#allocation2] sm:$0xff] }
  0x14   :  { %225 = vmatpush.msk.msra.mxu0 %vm99_vm0, %v89_v0  ;;  %v90_v2 = vld [vmem:[%s440_s0] sm:$0x3]  ;;  %vm95_vm1 = vcmask 89088   ;;  %v139_v3 = vld [vmem:[#allocation7 + $0x78] sm:$0xff]  ;;  %v138_v4 = vld [vmem:[#allocation7 + $0x70] sm:$0xff]  ;;  %s375_s24 = smov [#allocation10]  }
  0x15   :  { %144 = vmatpush.msra.mxu1 %v139_v3  ;;  %v137_v5 = vld [vmem:[#allocation7 + $0x68] sm:$0xff]  ;;  %v136_v6 = vld [vmem:[#allocation7 + $0x60] sm:$0xff]  ;;  %v135_v7 = vld [vmem:[#allocation7 + $0x58] sm:$0xff]  ;;  %s211_s25 = sshll.u32 %s375_s24, 4  ;;  %s213_s28 = sshll.u32 %s447_s7, 4  ;;  %s212_s25 = int_to_ptr.vmem [resolvable:$true] %s211_s25  ;;  %s214_s28 = int_to_ptr.hbm [resolvable:$true] %s213_s28 }
  0x16   :  { %118 = vmatpush.msra.mxu0 %v88_v1  ;;  %v134_v8 = vld [vmem:[#allocation7 + $0x50] sm:$0xff]  ;;  %v133_v9 = vld [vmem:[#allocation7 + $0x48] sm:$0xff]  ;;  %v132_v10 = vld [vmem:[#allocation7 + $0x40] sm:$0xff] }
  0x17   :  { %226 = vmatmul.msk.f32.vlgmr.msra.gmra.mxu0 %vm95_vm1, %v90_v2  ;;  %145 = vmatpush.msra.mxu1 %v138_v4  ;;  %v131_v11 = vld [vmem:[#allocation7 + $0x38] sm:$0xff]  ;;  %v130_v12 = vld [vmem:[#allocation7 + $0x30] sm:$0xff]  ;;  %v129_v13 = vld [vmem:[#allocation7 + $0x28] sm:$0xff] }
  0x18   :  { %v128_v14 = vld [vmem:[#allocation7 + $0x20] sm:$0xff]  ;;  %v127_v15 = vld [vmem:[#allocation7 + $0x18] sm:$0xff]  ;;  %v126_v16 = vld [vmem:[#allocation7 + $0x10] sm:$0xff] }
  0x19   :  { %146 = vmatpush.msra.mxu1 %v137_v5  ;;  %v125_v17 = vld [vmem:[#allocation7 + $0x8] sm:$0xff]  ;;  %v124_v18 = vld [vmem:[#allocation7] sm:$0xff]  ;;  %v180_v19 = vld [vmem:[#allocation8 + $0x78] sm:$0xff] }
  0x1a   :  { %v179_v20 = vld [vmem:[#allocation8 + $0x70] sm:$0xff]  ;;  %185 = vmatpush.msra.mxu2 %v180_v19  ;;  %v178_v21 = vld [vmem:[#allocation8 + $0x68] sm:$0xff]  ;;  %v177_v22 = vld [vmem:[#allocation8 + $0x60] sm:$0xff] }
  0x1b   :  { %147 = vmatpush.msra.mxu1 %v136_v6  ;;  %v176_v23 = vld [vmem:[#allocation8 + $0x58] sm:$0xff]  ;;  %v175_v24 = vld [vmem:[#allocation8 + $0x50] sm:$0xff]  ;;  %v174_v25 = vld [vmem:[#allocation8 + $0x48] sm:$0xff] }
  0x1c   :  { %186 = vmatpush.msra.mxu2 %v179_v20  ;;  %v173_v26 = vld [vmem:[#allocation8 + $0x40] sm:$0xff]  ;;  %v172_v27 = vld [vmem:[#allocation8 + $0x38] sm:$0xff]  ;;  %v171_v28 = vld [vmem:[#allocation8 + $0x30] sm:$0xff] }
  0x1d   :  { %148 = vmatpush.msra.mxu1 %v135_v7  ;;  %v170_v29 = vld [vmem:[#allocation8 + $0x28] sm:$0xff]  ;;  %v234_v30 = vld [vmem:[#allocation5] ss:$0 sm:$0xff]  ;;  %v169_v34 = vld [vmem:[#allocation8 + $0x20] sm:$0xff] }
  0x1e   :  { %187 = vmatpush.msra.mxu2 %v178_v21  ;;  %v168_v35 = vld [vmem:[#allocation8 + $0x18] sm:$0xff]  ;;  %v167_v36 = vld [vmem:[#allocation8 + $0x10] sm:$0xff]  ;;  %v166_v37 = vld [vmem:[#allocation8 + $0x8] sm:$0xff] }
  0x1f   :  { %149 = vmatpush.msra.mxu1 %v134_v8  ;;  %v165_v38 = vld [vmem:[#allocation8] sm:$0xff]  ;;  %v235_v39 = vld [vmem:[%s444_s4] ss:$0 sm:$0xff] }
  0x20   :  { %188 = vmatpush.msra.mxu2 %v177_v22  ;;  %v236_v43 = vld [vmem:[%s446_s6] ss:$0 sm:$0xff] }
  0x21   :  { %150 = vmatpush.msra.mxu1 %v133_v9 }
  0x22   :  { %189 = vmatpush.msra.mxu2 %v176_v23 }
  0x23   :  { %151 = vmatpush.msra.mxu1 %v132_v10 }
  0x24   :  { %190 = vmatpush.msra.mxu2 %v175_v24 }
  0x25   :  { %152 = vmatpush.msra.mxu1 %v131_v11 }
  0x26   :  { %191 = vmatpush.msra.mxu2 %v174_v25 }
  0x27   :  { %153 = vmatpush.msra.mxu1 %v130_v12 }
  0x28   :  { %192 = vmatpush.msra.mxu2 %v173_v26 }
  0x29   :  { %154 = vmatpush.msra.mxu1 %v129_v13 }
  0x2a   :  { %193 = vmatpush.msra.mxu2 %v172_v27 }
  0x2b   :  { %155 = vmatpush.msra.mxu1 %v128_v14 }
  0x2c   :  { %194 = vmatpush.msra.mxu2 %v171_v28 }
  0x2d   :  { %156 = vmatpush.msra.mxu1 %v127_v15 }
  0x2e   :  { %195 = vmatpush.msra.mxu2 %v170_v29 }
  0x2f   :  { %157 = vmatpush.msra.mxu1 %v126_v16 }
  0x30   :  { %196 = vmatpush.msra.mxu2 %v169_v34 }
  0x31   :  { %158 = vmatpush.msra.mxu1 %v125_v17 }
  0x32   :  { %197 = vmatpush.msra.mxu2 %v168_v35 }
  0x33   :  { %159 = vmatpush.msra.mxu1 %v124_v18 }
  0x34   :  { %198 = vmatpush.msra.mxu2 %v167_v36 }
  0x36   :  { %199 = vmatpush.msra.mxu2 %v166_v37 }
  0x38   :  { %200 = vmatpush.msra.mxu2 %v165_v38 }
  0x94   :  { %v120_v31 = vpop.f32.mrf.mxu0 }
  0x95   :  { %v121_v32 = vadd.f32 %v234_v30, %v120_v31 }
  0x97   :  { %237 = vtanh.f32 %v121_v32 }
  0x9d   :  { %v238_v33 = vpop.eup %237 }
  0x9e   :  { %160 = vmatmul.f32.vlgmr.msra.gmra.mxu1 %v238_v33 }
 0x11b   :  { %v161_v40 = vpop.f32.mrf.mxu1 }
 0x11c   :  { %v162_v41 = vadd.f32 %v235_v39, %v161_v40 }
 0x11e   :  { %239 = vtanh.f32 %v162_v41 }
 0x124   :  { %v240_v42 = vpop.eup %239 }
 0x125   :  { %201 = vmatmul.f32.vlgmr.msra.gmra.mxu2 %v240_v42 }
 0x1a8   :  { %v202_v44 = vpop.f32.mrf.mxu2 }
 0x1a9   :  { %v203_v45 = vadd.f32 %v236_v43, %v202_v44 }
 0x1ab   :  { %205 = vst [vmem:[#allocation10] sm:$0x3] %v203_v45 }
 0x1ac   :  { %216 = dma.vmem_to_hbm [thread:$0]  %s212_s25, 32, %s214_s28, [#allocation4]  }
 0x1ad   :  { %367 = dma.done.wait [#allocation4], 32  }
 0x1ae   :  { %368 = vsyncadd [#allocation4], 4294967264 }
 0x1af   :  { %221 = vsyncpa [#allocation3], 1 }
 0x1b0   :  { %222 = vsyncpa [#allocation6], 1 }
 0x1b1   :  { %223 = vsyncpa [#allocation9], 1 }
 0x1b2   :  { %224 = vsyncpa [#allocation4], 1 }

</bundles_post_ra>
